<compile_context>
chip_gen: v7x
topology: tpu7x:2x2x1
jax: 0.10.0
libtpu: 0.0.40
codegen_flags: <defaults>
</compile_context>

<pallas_src>
import jax
import jax.numpy as jnp
from jax.experimental import pallas as pl
from jax.experimental.pallas import tpu as pltpu

NUM_CLASSES = 6  # stands in for args.num_classes


def _round_up(x, m):
    return ((x + m - 1) // m) * m


def edge_loss_kernel(scores_ref, labels_ref, masks_ref, out_ref,
                     acc_bce_ref, acc_mask_ref):
    i = pl.program_id(0)

    @pl.when(i == 0)
    def _init():
        acc_bce_ref[...] = jnp.zeros_like(acc_bce_ref)
        acc_mask_ref[...] = jnp.zeros_like(acc_mask_ref)

    scores = scores_ref[...]       # (C, T) f32, probabilities in [0, 1]
    labels = labels_ref[...]       # (1, T) i32
    mask = masks_ref[...]          # (1, T) f32, binary

    c, t = scores.shape
    # one-hot built from a sublane iota compared against the (1, T) label row
    cls_idx = jax.lax.broadcasted_iota(jnp.int32, (c, t), 0)
    is_target = cls_idx == labels                      # (C, T) bool

    # single-log BCE; mask stays OUTSIDE the clamped log so masked / padded
    # edges contribute exactly 0 (matches PyTorch's -100 log clamp behavior).
    sel = jnp.where(is_target, scores, 1.0 - scores)
    bce = -(mask * jnp.maximum(jnp.log(sel), -100.0))  # (C, T)

    # elementwise accumulation only (VPU); full reduction deferred to epilogue
    acc_bce_ref[...] += bce
    acc_mask_ref[...] += mask

    @pl.when(i == pl.num_programs(0) - 1)
    def _finalize():
        loss_sum = jnp.sum(acc_bce_ref[...])
        mask_sum = jnp.float32(c) * jnp.sum(acc_mask_ref[...])
        out_ref[0, 0] = loss_sum / mask_sum


def edge_loss(all_scores, labels, masks, num_classes=NUM_CLASSES, tile_n=8192):
    """Matches the PyTorch forward: only all_scores[-1] contributes."""
    scores = jnp.asarray(all_scores[-1]).reshape(-1, num_classes)
    scores = scores.astype(jnp.float32)
    n = scores.shape[0]

    # lane tile over edges; keep it a multiple of 128 and not larger than needed
    tile_n = min(tile_n, _round_up(max(n, 1), 128))
    n_pad = _round_up(max(n, 1), tile_n)
    pad = n_pad - n

    # transpose so edges sit on the 128-lane axis; pad with mask=0 edges
    scores_t = jnp.pad(scores.T, ((0, 0), (0, pad)), constant_values=0.5)
    labels_row = jnp.pad(labels.reshape(1, -1).astype(jnp.int32),
                         ((0, 0), (0, pad)))
    masks_row = jnp.pad(masks.reshape(1, -1).astype(jnp.float32),
                        ((0, 0), (0, pad)))

    grid = (n_pad // tile_n,)

    out = pl.pallas_call(
        edge_loss_kernel,
        out_shape=jax.ShapeDtypeStruct((1, 1), jnp.float32),
        grid_spec=pltpu.PrefetchScalarGridSpec(
            num_scalar_prefetch=0,
            grid=grid,
            in_specs=[
                pl.BlockSpec((num_classes, tile_n), lambda i: (0, i)),
                pl.BlockSpec((1, tile_n), lambda i: (0, i)),
                pl.BlockSpec((1, tile_n), lambda i: (0, i)),
            ],
            out_specs=pl.BlockSpec(memory_space=pltpu.MemorySpace.SMEM),
            scratch_shapes=[
                pltpu.VMEM((num_classes, tile_n), jnp.float32),
                pltpu.VMEM((1, tile_n), jnp.float32),
            ],
        ),
        compiler_params=pltpu.CompilerParams(
            dimension_semantics=("arbitrary",),
        ),
    )(scores_t, labels_row, masks_row)
    return out[0, 0]


def edge_loss_ref(all_scores, labels, masks, num_classes=NUM_CLASSES):
    """Pure-JAX transliteration of the PyTorch module (two-log BCE form)."""
    scores = jnp.asarray(all_scores[-1]).reshape(-1, num_classes).astype(jnp.float32)
    m = jnp.broadcast_to(masks.reshape(-1, 1).astype(jnp.float32), scores.shape)
    one_hot = jax.nn.one_hot(labels.reshape(-1), num_classes, dtype=jnp.float32)
    p = scores * m
    t = one_hot * m
    log_p = jnp.maximum(jnp.log(p), -100.0)
    log_1mp = jnp.maximum(jnp.log(1.0 - p), -100.0)
    bce = -(t * log_p + (1.0 - t) * log_1mp)
    return jnp.sum(bce) / jnp.sum(m)


if __name__ == "__main__":
    key = jax.random.PRNGKey(0)
    k1, k2, k3 = jax.random.split(key, 3)

    n_edges = 64
    # BCELoss expects probabilities: emulate a sigmoid-activated score head.
    raw = jax.random.normal(k1, (n_edges, NUM_CLASSES), dtype=jnp.float32)
    scores = jax.nn.sigmoid(raw)
    all_scores = [scores]  # list of score tensors, as in the PyTorch module

    labels = jax.random.randint(k2, (n_edges,), 0, NUM_CLASSES)
    masks = (jax.random.uniform(k3, (n_edges,)) > 0.3).astype(jnp.float32)

    loss = edge_loss(all_scores, labels, masks)
    jax.block_until_ready(loss)

    ref = edge_loss_ref(all_scores, labels, masks)
    assert jnp.allclose(loss, ref, rtol=1e-5, atol=1e-5), (loss, ref)

    # TODO(synk): for very small N the pallas_call launch dominates; a pure-XLA
    # fallback path would be preferable in production.
    print("KERNEL_OK")
</pallas_src>

<mosaic_0001>
module attributes {stable_mosaic.version = 11 : i64} {
  func.func @edge_loss_kernel(%arg0: i32, %arg1: memref<6x128xf32, #tpu.memory_space<vmem>>, %arg2: memref<1x128xi32, #tpu.memory_space<vmem>>, %arg3: memref<1x128xf32, #tpu.memory_space<vmem>>, %arg4: memref<1x1xf32, #tpu.memory_space<smem>>, %arg5: memref<6x128xf32, #tpu.memory_space<vmem>>, %arg6: memref<1x128xf32, #tpu.memory_space<vmem>>) attributes {dimension_semantics = [#tpu.dimension_semantics<arbitrary>], iteration_bounds = array<i64: 1>, scalar_prefetch = 0 : i64, scratch_operands = 2 : i64, tpu.core_type = #tpu.core_type<tc>, window_params = [{transform_indices = @transform_0, window_bounds = array<i64: 6, 128>}, {transform_indices = @transform_1, window_bounds = array<i64: 1, 128>}, {transform_indices = @transform_2, window_bounds = array<i64: 1, 128>}, {transform_indices = @transform_3, window_bounds = array<i64: 1, 1>}]} {
    %c0_i32 = arith.constant 0 : i32
    %0 = arith.cmpi eq, %arg0, %c0_i32 : i32
    %1 = arith.extui %0 : i1 to i32
    %c0_i32_0 = arith.constant 0 : i32
    %2 = arith.cmpi ne, %1, %c0_i32_0 : i32
    scf.if %2 {
      %cst_18 = arith.constant 0.000000e+00 : f32
      %28 = vector.broadcast %cst_18 : f32 to vector<6x128xf32>
      %c0_19 = arith.constant 0 : index
      %c0_20 = arith.constant 0 : index
      %29 = vector.load %arg5[%c0_19, %c0_20] : memref<6x128xf32, #tpu.memory_space<vmem>>, vector<6x128xf32>
      tpu.vector_store %arg5[%c0_19, %c0_20], %28 {strides = array<i32>} : memref<6x128xf32, #tpu.memory_space<vmem>>, vector<6x128xf32>,
      %cst_21 = arith.constant 0.000000e+00 : f32
      %30 = vector.broadcast %cst_21 : f32 to vector<1x128xf32>
      %c0_22 = arith.constant 0 : index
      %c0_23 = arith.constant 0 : index
      %31 = vector.load %arg6[%c0_22, %c0_23] : memref<1x128xf32, #tpu.memory_space<vmem>>, vector<1x128xf32>
      tpu.vector_store %arg6[%c0_22, %c0_23], %30 {strides = array<i32>} : memref<1x128xf32, #tpu.memory_space<vmem>>, vector<1x128xf32>,
    } else {
    }
    %c0 = arith.constant 0 : index
    %c0_1 = arith.constant 0 : index
    %3 = vector.load %arg1[%c0, %c0_1] : memref<6x128xf32, #tpu.memory_space<vmem>>, vector<6x128xf32>
    %c0_2 = arith.constant 0 : index
    %c0_3 = arith.constant 0 : index
    %4 = vector.load %arg2[%c0_2, %c0_3] : memref<1x128xi32, #tpu.memory_space<vmem>>, vector<1x128xi32>
    %c0_4 = arith.constant 0 : index
    %c0_5 = arith.constant 0 : index
    %5 = vector.load %arg3[%c0_4, %c0_5] : memref<1x128xf32, #tpu.memory_space<vmem>>, vector<1x128xf32>
    %6 = tpu.iota {dimensions = array<i32: 0>} : vector<6x128xi32>
    %7 = vector.broadcast %4 : vector<1x128xi32> to vector<6x128xi32>
    %8 = arith.cmpi eq, %6, %7 : vector<6x128xi32>
    %cst = arith.constant 1.000000e+00 : f32
    %9 = vector.broadcast %cst : f32 to vector<6x128xf32>
    %10 = arith.subf %9, %3 : vector<6x128xf32>
    %11 = arith.select %8, %3, %10 : vector<6x128xi1>, vector<6x128xf32>
    %12 = math.log %11 : vector<6x128xf32>
    %cst_6 = arith.constant -1.000000e+02 : f32
    %13 = vector.broadcast %cst_6 : f32 to vector<6x128xf32>
    %14 = arith.maximumf %12, %13 : vector<6x128xf32>
    %15 = vector.broadcast %5 : vector<1x128xf32> to vector<6x128xf32>
    %16 = arith.mulf %15, %14 : vector<6x128xf32>
    %cst_7 = arith.constant 0.000000e+00 : f32
    %17 = vector.broadcast %cst_7 : f32 to vector<6x128xf32>
    %18 = arith.subf %17, %16 : vector<6x128xf32>
    %c0_8 = arith.constant 0 : index
    %c0_9 = arith.constant 0 : index
    %19 = vector.load %arg5[%c0_8, %c0_9] : memref<6x128xf32, #tpu.memory_space<vmem>>, vector<6x128xf32>
    %20 = arith.addf %19, %18 : vector<6x128xf32>
    %c0_10 = arith.constant 0 : index
    %c0_11 = arith.constant 0 : index
    %21 = vector.load %arg5[%c0_10, %c0_11] : memref<6x128xf32, #tpu.memory_space<vmem>>, vector<6x128xf32>
    tpu.vector_store %arg5[%c0_10, %c0_11], %20 {strides = array<i32>} : memref<6x128xf32, #tpu.memory_space<vmem>>, vector<6x128xf32>,
    %c0_12 = arith.constant 0 : index
    %c0_13 = arith.constant 0 : index
    %22 = vector.load %arg6[%c0_12, %c0_13] : memref<1x128xf32, #tpu.memory_space<vmem>>, vector<1x128xf32>
    %23 = arith.addf %22, %5 : vector<1x128xf32>
    %c0_14 = arith.constant 0 : index
    %c0_15 = arith.constant 0 : index
    %24 = vector.load %arg6[%c0_14, %c0_15] : memref<1x128xf32, #tpu.memory_space<vmem>>, vector<1x128xf32>
    tpu.vector_store %arg6[%c0_14, %c0_15], %23 {strides = array<i32>} : memref<1x128xf32, #tpu.memory_space<vmem>>, vector<1x128xf32>,
    %c0_i32_16 = arith.constant 0 : i32
    %25 = arith.cmpi eq, %arg0, %c0_i32_16 : i32
    %26 = arith.extui %25 : i1 to i32
    %c0_i32_17 = arith.constant 0 : i32
    %27 = arith.cmpi ne, %26, %c0_i32_17 : i32
    scf.if %27 {
      %c0_18 = arith.constant 0 : index
      %c0_19 = arith.constant 0 : index
      %28 = vector.load %arg5[%c0_18, %c0_19] : memref<6x128xf32, #tpu.memory_space<vmem>>, vector<6x128xf32>
      %29 = vector.shape_cast %28 : vector<6x128xf32> to vector<1x6x128xf32>
      %cst_20 = arith.constant dense<0.000000e+00> : vector<1xf32>
      %30 = vector.multi_reduction <add>, %29, %cst_20 [1, 2] : vector<1x6x128xf32> to vector<1xf32>
      %31 = vector.shape_cast %30 : vector<1xf32> to vector<1x1x1xf32>
      %32 = vector.extract %31[0, 0, 0] : f32 from vector<1x1x1xf32>
      %c0_21 = arith.constant 0 : index
      %c0_22 = arith.constant 0 : index
      %33 = vector.load %arg6[%c0_21, %c0_22] : memref<1x128xf32, #tpu.memory_space<vmem>>, vector<1x128xf32>
      %34 = vector.shape_cast %33 : vector<1x128xf32> to vector<1x1x128xf32>
      %cst_23 = arith.constant dense<0.000000e+00> : vector<1xf32>
      %35 = vector.multi_reduction <add>, %34, %cst_23 [1, 2] : vector<1x1x128xf32> to vector<1xf32>
      %36 = vector.shape_cast %35 : vector<1xf32> to vector<1x1x1xf32>
      %37 = vector.extract %36[0, 0, 0] : f32 from vector<1x1x1xf32>
      %cst_24 = arith.constant 6.000000e+00 : f32
      %38 = arith.mulf %cst_24, %37 : f32
      %39 = arith.divf %32, %38 : f32
      %c0_25 = arith.constant 0 : index
      %c0_26 = arith.constant 0 : index
      %40 = memref.load %arg4[%c0_25, %c0_26] : memref<1x1xf32, #tpu.memory_space<smem>>
      memref.store %39, %arg4[%c0_25, %c0_26] : memref<1x1xf32, #tpu.memory_space<smem>>
    } else {
    }
    return
  }
  func.func @transform_0(%arg0: i32) -> (i32, i32) {
    %c0_i32 = arith.constant 0 : i32
    %c0_i32_0 = arith.constant 0 : i32
    return %c0_i32, %arg0 : i32, i32
  }
  func.func @transform_1(%arg0: i32) -> (i32, i32) {
    %c0_i32 = arith.constant 0 : i32
    %c0_i32_0 = arith.constant 0 : i32
    return %c0_i32, %arg0 : i32, i32
  }
  func.func @transform_2(%arg0: i32) -> (i32, i32) {
    %c0_i32 = arith.constant 0 : i32
    %c0_i32_0 = arith.constant 0 : i32
    return %c0_i32, %arg0 : i32, i32
  }
  func.func @transform_3(%arg0: i32) -> (i32, i32) {
    %c0_i32 = arith.constant 0 : i32
    %c0_i32_0 = arith.constant 0 : i32
    %c0_i32_1 = arith.constant 0 : i32
    return %c0_i32, %c0_i32_0 : i32, i32
  }
}

</mosaic_0001>

<bundles_post_ra>
// kernel: tpu_custom_call.1
= control target key start
LH: loop header
LB: loop body
LE: loop exit
PB: predicated region body
PF: predicated region fallthrough
CT: control target
= control target key end

     0   :  { %8 = vsyncpa [#allocation5], 0  ;;  %s213_s0 = inlined_call_operand.hbm [shape: f32[6,128], index: 0, kind: input, shape index: {}]   ;;  %s214_s1 = inlined_call_operand.vmem [shape: s32[1,128], index: 1, kind: input, shape index: {}]   ;;  %s215_s2 = inlined_call_operand.vmem [shape: f32[1,128], index: 2, kind: input, shape index: {}]   ;;  %s216_s3 = inlined_call_operand.hbm [shape: f32[1,1], index: 3, kind: output, shape index: {}]  }
   0x1   :  { %9 = vsyncpa [#allocation6], 0  ;;  %s160_s12 = smov [#allocation4]   ;;  %s124_s16 = scalar_lea.hbm %s213_s0, 128 }
   0x2   :  { %s16_s13 = sshll.u32 %s160_s12, 4  ;;  %p125_p0 = scmp.ne.s32.totalorder %s213_s0, %s124_s16  ;;  %s17_s13 = int_to_ptr.vmem [resolvable:$true] %s16_s13 }
   0x3   :  { %p128_p1 = scmp.lt.u32.totalorder %s124_s16, %s213_s0 }
   0x5   :  { %p130_p2 = pnand %p128_p1, %p125_p0 }
   0x7   :  { %133 = shalt.err (!%p130_p2)
}
   0x8   :  { %s134_s21 = scalar_lea.vmem %s17_s13, 128  ;;  %p139_p4 = scmp.lt.s32.totalorder %s17_s13, %s17_s13 }
   0x9   :  { %p135_p3 = scmp.ne.s32.totalorder %s17_s13, %s134_s21  ;;  %p140_p5 = scmp.lt.s32.totalorder %s134_s21, %s134_s21 }
   0xb   :  { %p141_p6 = por %p140_p5, %p139_p4 }
   0xd   :  { %p142_p7 = pnand %p141_p6, %p135_p3 }
   0xf   :  { %145 = shalt.err (!%p142_p7)
}
  0x10   :  { %19 = dma.hbm_to_vmem [thread:$0]  %s213_s0, 128, %s17_s13, [#allocation5]  }
  0x11   :  { %156 = dma.done.wait [#allocation5], 128  }
  0x12   :  { %157 = vsyncadd [#allocation5], 4294967168  ;;  %v36_v0 = vlaneseq  ;;  %v161_v1 = vmov 0.0   ;;  %v33_v3 = vld [vmem:[#allocation4] sm:$0x3f]  ;;  %vm66_vm1 = vcmask 1045504  }
  0x13   :  { %31 = vst [vmem:[#allocation2] sm:$0x3f] %v161_v1  ;;  %32 = vst [vmem:[#allocation3] sm:$0x1] %v161_v1  ;;  %v110_v4 = vld [vmem:[%s214_s1] ss:$0 sm:$0xff] }
  0x14   :  { %v37_v2 = vshrl.u32 %v36_v0, 7  ;;  %v35_v5 = vld [vmem:[%s215_s2] sm:$0x1]  ;;  %v43_v6 = vsub.f32 1.0, %v33_v3  ;;  %vm78_vm2 = vcmask 1040384   ;;  %s146_s5 = scalar_lea.hbm %s216_s3, 16 }
  0x15   :  { %p147_p8 = scmp.ne.s32.totalorder %s216_s3, %s146_s5  ;;  %p150_p9 = scmp.lt.u32.totalorder %s146_s5, %s216_s3 }
  0x16   :  { %vm42_vm0 = vcmp.eq.s32.totalorder %v37_v2, %v110_v4  ;;  %v51_v10 = vsub.s32 0, %v37_v2 }
  0x17   :  { %v44_v9 = vsel %vm42_vm0, %v33_v3, %v43_v6  ;;  %p152_p10 = pnand %p150_p9, %p147_p8 }
  0x18   :  { %120 = vlog2.f32 %v44_v9  ;;  %v52_v13 = vrot.slane %v35_v5, %v51_v10 }
  0x1a   :  { %v59_v7 = vld [vmem:[#allocation3] sm:$0x1]  ;;  %v56_v16 = vld [vmem:[#allocation2] sm:$0x3f] }
  0x1b   :  { %v60_v8 = vadd.f32 %v59_v7, %v35_v5 }
  0x1d   :  { %61 = vst [vmem:[#allocation3] sm:$0x1] %v60_v8 }
  0x22   :  { %v121_v11 = vpop.eup %120 }
  0x23   :  { %v46_v12 = vmul.f32 0.6931472, %v121_v11 }
  0x24   :  { %v77_v20 = vld [vmem:[#allocation3] sm:$0x1] }
  0x25   :  { %v47_v14 = vmax.f32 %v46_v12, -100.0  ;;  %v79_v22 = vsel %vm78_vm2, %v77_v20, 0.0 }
  0x27   :  { %v54_v15 = vmul.f32 %v52_v13, %v47_v14 }
  0x29   :  { %v55_v17 = vsub.f32 0.0, %v54_v15 }
  0x2b   :  { %v57_v18 = vadd.f32 %v56_v16, %v55_v17 }
  0x2d   :  { %58 = vst [vmem:[#allocation2] sm:$0x3f] %v57_v18 }
  0x34   :  { %v65_v19 = vld [vmem:[#allocation2] sm:$0x3f] }
  0x35   :  { %v67_v21 = vsel %vm66_vm1, %v65_v19, 0.0 }
  0x36   :  { %68 = vadd.xlane.f32.xlu0 %v67_v21 }
  0x3a   :  { %80 = vadd.xlane.f32.xlu0 %v79_v22 }
  0xc3   :  { %v69_v23 = vpop.xlane.xlu0 %68 }
  0xc4   :  { %v70_v24 = vrot.slane %v69_v23, 4 }
  0xc6   :  { %v71_v25 = vadd.f32 %v70_v24, %v69_v23 }
  0xc7   :  { %v81_v26 = vpop.xlane.xlu0 %80 }
  0xc8   :  { %v72_v27 = vrot.slane %v71_v25, 2  ;;  %v82_v28 = vrot.slane %v81_v26, 4 }
  0xca   :  { %v83_v29 = vadd.f32 %v82_v28, %v81_v26  ;;  %v73_v30 = vadd.f32 %v72_v27, %v71_v25 }
  0xcc   :  { %v84_v31 = vrot.slane %v83_v29, 2  ;;  %v74_v32 = vrot.slane %v73_v30, 1 }
  0xce   :  { %v85_v33 = vadd.f32 %v84_v31, %v83_v29  ;;  %v75_v34 = vadd.f32 %v74_v32, %v73_v30 }
  0xd0   :  { %111 = vpush %v75_v34  ;;  %v86_v35 = vrot.slane %v85_v33, 1 }
  0xd2   :  { %v87_v36 = vadd.f32 %v86_v35, %v85_v33 }
  0xd4   :  { %113 = vpush %v87_v36 }
 0x101   :  { %s112_s0 = spop %111 }
 0x105   :  { %s114_s1 = spop %113 }
 0x106   :  { %s89_s2 = smul.f32 6.0, %s114_s1 }
 0x108   :  { %v90_v37 = vstv %s89_s2 }
 0x109   :  { %122 = vrcp.f32 %v90_v37 }
 0x113   :  { %v123_v38 = vpop.eup %122 }
 0x114   :  { %115 = vpush %v123_v38 }
 0x145   :  { %s116_s28 = spop %115 }
 0x146   :  { %s93_s29 = smul.f32 %s116_s28, %s112_s0 }
 0x148   :  { %95 = sst [smem:[#allocation7]] %s93_s29 }
 0x149   :  { %155 = shalt.err (!%p152_p10)
}
 0x14a   :  { %s162_s10 = smov [#allocation7]  }
 0x14b   :  { %103 = dma.smem_to_hbm %s162_s10, 16, %s216_s3, [#allocation6]  }
 0x14c   :  { %158 = dma.done.wait [#allocation6], 16  }
 0x14d   :  { %159 = vsyncadd [#allocation6], 4294967280 }
 0x14e   :  { %107 = sfence }
 0x14f   :  { %108 = vsyncpa [#allocation5], 1 }
 0x150   :  { %109 = vsyncpa [#allocation6], 1 }

</bundles_post_ra>
